<compile_context>
chip_gen: v5e
topology: v5e:2x2
jax: 0.10.0
libtpu: 0.0.40
codegen_flags: <defaults>
</compile_context>

<pallas_src>
import functools
import math

import jax
import jax.numpy as jnp
from jax.experimental import pallas as pl
from jax.experimental.pallas import tpu as pltpu


LANE = 128  # TPU lane width; kernel-internal last dims are padded to this.


# ----------------------------------------------------------------------------
# Fused kernel.
#   fused  = obs @ [W1a | Wd1_obs]                (one 256-wide MXU push)
#   h      = relu(fused[:, :128] + b1a)
#   latent = act_bound * tanh(relu(h@W2a+b2a) @ W3a + b3a)
#   g      = relu(fused[:, 128:] + latent@Wd1_z + bd1)
#   out    = act_bound * tanh(relu(g@Wd2+bd2) @ Wd3 + bd3)
# Biases live in a single (6, LANE) slab: rows [b1a, b2a, b3a, bd1, bd2, bd3].
# ----------------------------------------------------------------------------
def _plas_fused_kernel(obs_ref, w1f_ref, w2a_ref, w3a_ref,
                       wd1z_ref, wd2_ref, wd3_ref, b_ref, o_ref,
                       *, act_bound: float):
    # obs stays f32 in HBM/VMEM; cast to bf16 only as an MXU input.
    obs = obs_ref[...].astype(jnp.bfloat16)

    # Fused obs-fed layer: cols [:LANE] = actor L1, cols [LANE:] = decoder L1
    # obs partial.  Slice boundary is lane-tile aligned (128).
    fused = jnp.dot(obs, w1f_ref[...], preferred_element_type=jnp.float32)
    dec_obs = fused[:, LANE:]
    h = jnp.maximum(fused[:, :LANE] + b_ref[0:1, :], 0.0)          # ReLU (VPU, f32)

    h = jnp.dot(h.astype(jnp.bfloat16), w2a_ref[...],
                preferred_element_type=jnp.float32)
    h = jnp.maximum(h + b_ref[1:2, :], 0.0)                        # ReLU (VPU, f32)
    latent = jnp.tanh(                                             # EUP tanh, f32
        jnp.dot(h.astype(jnp.bfloat16), w3a_ref[...],
                preferred_element_type=jnp.float32) + b_ref[2:3, :])
    if act_bound != 1.0:                                           # static guard
        latent = act_bound * latent

    # Decoder layer-1 as a single accumulated expression (MRB in-place add on
    # v7x; identical MRF drain on v5e/v6e).  Padded latent cols are exactly 0
    # and padded Wd1_z rows are 0 -> algebraically exact.
    g = (dec_obs
         + jnp.dot(latent.astype(jnp.bfloat16), wd1z_ref[...],
                   preferred_element_type=jnp.float32)
         + b_ref[3:4, :])
    g = jnp.maximum(g, 0.0)
    g = jnp.dot(g.astype(jnp.bfloat16), wd2_ref[...],
                preferred_element_type=jnp.float32)
    g = jnp.maximum(g + b_ref[4:5, :], 0.0)
    out = jnp.tanh(
        jnp.dot(g.astype(jnp.bfloat16), wd3_ref[...],
                preferred_element_type=jnp.float32) + b_ref[5:6, :])
    if act_bound != 1.0:
        out = act_bound * out

    o_ref[...] = out.astype(o_ref.dtype)                           # lane-dense store


# ----------------------------------------------------------------------------
# Padding helpers (zero-pad to lane-dense shapes).
# ----------------------------------------------------------------------------
def _pad_cols(x, target):
    pad = target - x.shape[-1]
    if pad <= 0:
        return x
    return jnp.pad(x, [(0, 0)] * (x.ndim - 1) + [(0, pad)])


def _pad_rows(x, target):
    pad = target - x.shape[0]
    if pad <= 0:
        return x
    return jnp.pad(x, [(0, pad)] + [(0, 0)] * (x.ndim - 1))


# ----------------------------------------------------------------------------
# Parameter prep: fuse / split / pad / cast (done once in the wrapper).
# ----------------------------------------------------------------------------
def prepare_plas_params(actor_params, decoder_params, obs_dim,
                        weight_dtype=jnp.bfloat16):
    w1a, b1a, w2a, b2a, w3a, b3a = actor_params
    wd1, bd1, wd2, bd2, wd3, bd3 = decoder_params
    hidden = w1a.shape[1]
    assert hidden == LANE and w2a.shape[1] == LANE and wd2.shape[1] == LANE, \
        "this script assumes hidden width == 128 (lane-dense)"

    # lane-pad narrow output layers; zero cols -> tanh(0)=0 -> sliced off later
    w3a_p = _pad_cols(w3a, LANE)
    b3a_p = _pad_cols(b3a.reshape(-1), LANE)
    wd3_p = _pad_cols(wd3, LANE)
    bd3_p = _pad_cols(bd3.reshape(-1), LANE)

    # split decoder layer-1:  concat([obs, z]) @ Wd1 == obs@Wd1[:od] + z@Wd1[od:]
    wd1_obs = wd1[:obs_dim, :]                         # (obs_dim, hidden)
    wd1_z = _pad_rows(wd1[obs_dim:, :], LANE)          # (128, hidden), zero pad rows

    # fuse both obs-fed matmuls into one 256-wide weight
    w1_fused = jnp.concatenate([w1a, wd1_obs], axis=1)  # (obs_dim, 2*hidden)

    # single f32 bias slab: rows = [b1a, b2a, b3a, bd1, bd2, bd3]
    biases = jnp.stack([b1a.reshape(-1), b2a.reshape(-1), b3a_p,
                        bd1.reshape(-1), bd2.reshape(-1), bd3_p],
                       axis=0).astype(jnp.float32)      # (6, 128)

    weights = tuple(w.astype(weight_dtype)
                    for w in (w1_fused, w2a, w3a_p, wd1_z, wd2, wd3_p))
    return weights, biases


# ----------------------------------------------------------------------------
# Wrapper: PLAS_Actor.forward (use_ptb=False) with a synthetic MLP decoder.
#   a = tanh(actor_mlp(obs)); latent = act_bound * a
#   return decoder(obs, z=latent)  == act_bound * tanh(dec_mlp(concat[obs, z]))
# ----------------------------------------------------------------------------
def plas_actor_forward(obs, actor_params, decoder_params, act_bound, act_dim,
                       *, tile_m=256):
    batch, obs_dim = obs.shape
    weights, biases = prepare_plas_params(actor_params, decoder_params, obs_dim)
    w1f, w2a, w3a_p, wd1z, wd2, wd3_p = weights

    kernel = functools.partial(_plas_fused_kernel, act_bound=float(act_bound))

    weight_bytes = (sum(int(w.size) * w.dtype.itemsize for w in weights)
                    + int(biases.size) * biases.dtype.itemsize)
    cost = pl.CostEstimate(
        flops=int(batch) * 2 * (obs_dim * 2 * LANE + 5 * LANE * LANE),
        transcendentals=int(batch) * 2 * LANE,
        bytes_accessed=weight_bytes + int(batch) * (obs_dim + LANE) * 4,
    )

    if batch <= tile_m:
        # Single-block, grid-less path (inference-sized batches).
        vmem = pl.BlockSpec(memory_space=pltpu.MemorySpace.VMEM)
        out_padded = pl.pallas_call(
            kernel,
            out_shape=jax.ShapeDtypeStruct((batch, LANE), obs.dtype),
            in_specs=[vmem] * 8,
            out_specs=vmem,
            cost_estimate=cost,
        )(obs, *weights, biases)
        return out_padded[:, :act_dim]

    # Batch-gridded path: rows split across grid steps ("parallel" -> v7x's two
    # TensorCores split the work; no-op on v5e/v6e); weights pinned with a
    # constant index_map so the same VMEM block is reused every step.
    padded = pl.cdiv(batch, tile_m) * tile_m
    obs_p = _pad_rows(obs, padded)

    def pinned(shape):
        return pl.BlockSpec(shape, lambda i: (0, 0))

    out_padded = pl.pallas_call(
        kernel,
        out_shape=jax.ShapeDtypeStruct((padded, LANE), obs.dtype),
        grid=(padded // tile_m,),
        in_specs=[
            pl.BlockSpec((tile_m, obs_dim), lambda i: (i, 0)),
            pinned(w1f.shape), pinned(w2a.shape), pinned(w3a_p.shape),
            pinned(wd1z.shape), pinned(wd2.shape), pinned(wd3_p.shape),
            pinned(biases.shape),
        ],
        out_specs=pl.BlockSpec((tile_m, LANE), lambda i: (i, 0)),
        cost_estimate=cost,
        compiler_params=pltpu.CompilerParams(
            dimension_semantics=("parallel",)),
    )(obs_p, *weights, biases)
    return out_padded[:batch, :act_dim]


# ----------------------------------------------------------------------------
# Deterministic parameter construction (PyTorch nn.Linear-style uniform init).
# ----------------------------------------------------------------------------
def init_linear(key, fan_in, fan_out, dtype=jnp.float32):
    kw, kb = jax.random.split(key)
    bound = 1.0 / math.sqrt(fan_in)
    w = jax.random.uniform(kw, (fan_in, fan_out), dtype, minval=-bound, maxval=bound)
    b = jax.random.uniform(kb, (1, fan_out), dtype, minval=-bound, maxval=bound)
    return w, b


def init_mlp(key, sizes, dtype=jnp.float32):
    keys = jax.random.split(key, len(sizes) - 1)
    params = []
    for k, d_in, d_out in zip(keys, sizes[:-1], sizes[1:]):
        w, b = init_linear(k, d_in, d_out, dtype)
        params += [w, b]
    return tuple(params)


# ----------------------------------------------------------------------------
# References.
# ----------------------------------------------------------------------------
def reference_forward_matched(obs, actor_params, decoder_params, act_bound):
    """Mirrors the kernel numerics: bf16 matmul inputs, f32 accumulation."""
    w1a, b1a, w2a, b2a, w3a, b3a = actor_params
    wd1, bd1, wd2, bd2, wd3, bd3 = decoder_params
    bf = jnp.bfloat16

    def mm(x, w):
        return jnp.dot(x.astype(bf), w.astype(bf),
                       preferred_element_type=jnp.float32)

    obs_dim = obs.shape[1]
    h = jax.nn.relu(mm(obs, w1a) + b1a)
    h = jax.nn.relu(mm(h, w2a) + b2a)
    latent = act_bound * jnp.tanh(mm(h, w3a) + b3a)
    g = jax.nn.relu(mm(obs, wd1[:obs_dim]) + mm(latent, wd1[obs_dim:]) + bd1)
    g = jax.nn.relu(mm(g, wd2) + bd2)
    return act_bound * jnp.tanh(mm(g, wd3) + bd3)


def reference_forward_f32(obs, actor_params, decoder_params, act_bound):
    """Original-module semantics in full f32 (with the concat)."""
    w1a, b1a, w2a, b2a, w3a, b3a = actor_params
    wd1, bd1, wd2, bd2, wd3, bd3 = decoder_params
    hp = jax.lax.Precision.HIGHEST
    h = jax.nn.relu(jnp.dot(obs, w1a, precision=hp) + b1a)
    h = jax.nn.relu(jnp.dot(h, w2a, precision=hp) + b2a)
    latent = act_bound * jnp.tanh(jnp.dot(h, w3a, precision=hp) + b3a)
    x = jnp.concatenate([obs, latent], axis=1)
    g = jax.nn.relu(jnp.dot(x, wd1, precision=hp) + bd1)
    g = jax.nn.relu(jnp.dot(g, wd2, precision=hp) + bd2)
    return act_bound * jnp.tanh(jnp.dot(g, wd3, precision=hp) + bd3)


# TODO(synk): use_ptb=True branch (ptb_mlp perturbation + clamp) not exercised;
# the module default is use_ptb=False.  The external `decoder` argument of
# forward() is modeled as a synthetic deterministic 3-layer MLP decoder.
# TODO(synk): if this actor runs every env step with fixed weights, keep the
# bf16 weights resident across calls (cross-pallas_call prefetch) instead of
# re-DMA'ing ~180 KB per call.


if __name__ == "__main__":
    # Small shapes consistent with the module.
    batch = 8
    obs_dim = 32
    act_dim = 8
    latent_act_dim = 16
    actor_hidden = [128, 128]
    decoder_hidden = [128, 128]
    act_bound = 1.0

    root = jax.random.PRNGKey(0)
    k_obs, k_actor, k_dec, k_big = jax.random.split(root, 4)

    obs = jax.random.normal(k_obs, (batch, obs_dim), jnp.float32)
    actor_params = init_mlp(k_actor, [obs_dim] + actor_hidden + [latent_act_dim])
    decoder_params = init_mlp(
        k_dec, [obs_dim + latent_act_dim] + decoder_hidden + [act_dim])

    # --- small-batch (grid-less) path -------------------------------------
    out = plas_actor_forward(obs, actor_params, decoder_params, act_bound, act_dim)
    out = jax.block_until_ready(out)

    ref_m = reference_forward_matched(obs, actor_params, decoder_params, act_bound)
    ref_f = reference_forward_f32(obs, actor_params, decoder_params, act_bound)

    assert out.shape == (batch, act_dim), out.shape
    assert bool(jnp.all(jnp.isfinite(out)))
    assert bool(jnp.all(jnp.abs(out) <= act_bound + 1e-6))
    assert bool(jnp.allclose(out, ref_m, rtol=2e-3, atol=2e-3)), \
        float(jnp.max(jnp.abs(out - ref_m)))
    assert bool(jnp.allclose(out, ref_f, rtol=3e-2, atol=3e-2)), \
        float(jnp.max(jnp.abs(out - ref_f)))

    # --- batch-gridded path (batch > tile_m, exercises padding + grid) ----
    big_batch = 300
    obs_big = jax.random.normal(k_big, (big_batch, obs_dim), jnp.float32)
    out_big = plas_actor_forward(obs_big, actor_params, decoder_params,
                                 act_bound, act_dim, tile_m=128)
    out_big = jax.block_until_ready(out_big)
    ref_big = reference_forward_matched(obs_big, actor_params, decoder_params,
                                        act_bound)
    assert out_big.shape == (big_batch, act_dim), out_big.shape
    assert bool(jnp.allclose(out_big, ref_big, rtol=2e-3, atol=2e-3)), \
        float(jnp.max(jnp.abs(out_big - ref_big)))

    print("KERNEL_OK")
</pallas_src>

<mosaic_0001>
module attributes {stable_mosaic.version = 11 : i64} {
  func.func @_plas_fused_kernel(%arg0: memref<8x32xf32, #tpu.memory_space<vmem>>, %arg1: memref<32x256xbf16, #tpu.memory_space<vmem>>, %arg2: memref<128x128xbf16, #tpu.memory_space<vmem>>, %arg3: memref<128x128xbf16, #tpu.memory_space<vmem>>, %arg4: memref<128x128xbf16, #tpu.memory_space<vmem>>, %arg5: memref<128x128xbf16, #tpu.memory_space<vmem>>, %arg6: memref<128x128xbf16, #tpu.memory_space<vmem>>, %arg7: memref<6x128xf32, #tpu.memory_space<vmem>>, %arg8: memref<8x128xf32, #tpu.memory_space<vmem>>) attributes {dimension_semantics = [], scalar_prefetch = 0 : i64, scratch_operands = 0 : i64, tpu.core_type = #tpu.core_type<tc>} {
    %c0 = arith.constant 0 : index
    %c0_0 = arith.constant 0 : index
    %0 = vector.load %arg0[%c0, %c0_0] : memref<8x32xf32, #tpu.memory_space<vmem>>, vector<8x32xf32>
    %1 = arith.truncf %0 : vector<8x32xf32> to vector<8x32xbf16>
    %c0_1 = arith.constant 0 : index
    %c0_2 = arith.constant 0 : index
    %2 = vector.load %arg1[%c0_1, %c0_2] : memref<32x256xbf16, #tpu.memory_space<vmem>>, vector<32x256xbf16>
    %cst = arith.constant dense<0.000000e+00> : vector<8x256xf32>
    %3 = tpu.matmul %1, %2, %cst {dimension_numbers = #tpu.dot_dimension_numbers<[1], [0], [0], [1], [0, 0, 1, 1], [], []>} : vector<8x32xbf16>, vector<32x256xbf16>, vector<8x256xf32> -> vector<8x256xf32>
    %4 = vector.extract_strided_slice %3 {offsets = [0, 128], sizes = [8, 128], strides = [1, 1]} : vector<8x256xf32> to vector<8x128xf32>
    %5 = vector.extract_strided_slice %3 {offsets = [0, 0], sizes = [8, 128], strides = [1, 1]} : vector<8x256xf32> to vector<8x128xf32>
    %c0_3 = arith.constant 0 : index
    %c0_4 = arith.constant 0 : index
    %6 = vector.load %arg7[%c0_3, %c0_4] : memref<6x128xf32, #tpu.memory_space<vmem>>, vector<1x128xf32>
    %7 = vector.broadcast %6 : vector<1x128xf32> to vector<8x128xf32>
    %8 = arith.addf %5, %7 : vector<8x128xf32>
    %cst_5 = arith.constant 0.000000e+00 : f32
    %9 = vector.broadcast %cst_5 : f32 to vector<8x128xf32>
    %10 = arith.maximumf %8, %9 : vector<8x128xf32>
    %11 = arith.truncf %10 : vector<8x128xf32> to vector<8x128xbf16>
    %c0_6 = arith.constant 0 : index
    %c0_7 = arith.constant 0 : index
    %12 = vector.load %arg2[%c0_6, %c0_7] : memref<128x128xbf16, #tpu.memory_space<vmem>>, vector<128x128xbf16>
    %cst_8 = arith.constant dense<0.000000e+00> : vector<8x128xf32>
    %13 = tpu.matmul %11, %12, %cst_8 {dimension_numbers = #tpu.dot_dimension_numbers<[1], [0], [0], [1], [0, 0, 1, 1], [], []>} : vector<8x128xbf16>, vector<128x128xbf16>, vector<8x128xf32> -> vector<8x128xf32>
    %c1 = arith.constant 1 : index
    %c0_9 = arith.constant 0 : index
    %14 = vector.load %arg7[%c1, %c0_9] : memref<6x128xf32, #tpu.memory_space<vmem>>, vector<1x128xf32>
    %15 = vector.broadcast %14 : vector<1x128xf32> to vector<8x128xf32>
    %16 = arith.addf %13, %15 : vector<8x128xf32>
    %cst_10 = arith.constant 0.000000e+00 : f32
    %17 = vector.broadcast %cst_10 : f32 to vector<8x128xf32>
    %18 = arith.maximumf %16, %17 : vector<8x128xf32>
    %19 = arith.truncf %18 : vector<8x128xf32> to vector<8x128xbf16>
    %c0_11 = arith.constant 0 : index
    %c0_12 = arith.constant 0 : index
    %20 = vector.load %arg3[%c0_11, %c0_12] : memref<128x128xbf16, #tpu.memory_space<vmem>>, vector<128x128xbf16>
    %cst_13 = arith.constant dense<0.000000e+00> : vector<8x128xf32>
    %21 = tpu.matmul %19, %20, %cst_13 {dimension_numbers = #tpu.dot_dimension_numbers<[1], [0], [0], [1], [0, 0, 1, 1], [], []>} : vector<8x128xbf16>, vector<128x128xbf16>, vector<8x128xf32> -> vector<8x128xf32>
    %c2 = arith.constant 2 : index
    %c0_14 = arith.constant 0 : index
    %22 = vector.load %arg7[%c2, %c0_14] : memref<6x128xf32, #tpu.memory_space<vmem>>, vector<1x128xf32>
    %23 = vector.broadcast %22 : vector<1x128xf32> to vector<8x128xf32>
    %24 = arith.addf %21, %23 : vector<8x128xf32>
    %25 = math.tanh %24 : vector<8x128xf32>
    %26 = arith.truncf %25 : vector<8x128xf32> to vector<8x128xbf16>
    %c0_15 = arith.constant 0 : index
    %c0_16 = arith.constant 0 : index
    %27 = vector.load %arg4[%c0_15, %c0_16] : memref<128x128xbf16, #tpu.memory_space<vmem>>, vector<128x128xbf16>
    %cst_17 = arith.constant dense<0.000000e+00> : vector<8x128xf32>
    %28 = tpu.matmul %26, %27, %cst_17 {dimension_numbers = #tpu.dot_dimension_numbers<[1], [0], [0], [1], [0, 0, 1, 1], [], []>} : vector<8x128xbf16>, vector<128x128xbf16>, vector<8x128xf32> -> vector<8x128xf32>
    %29 = arith.addf %4, %28 : vector<8x128xf32>
    %c3 = arith.constant 3 : index
    %c0_18 = arith.constant 0 : index
    %30 = vector.load %arg7[%c3, %c0_18] : memref<6x128xf32, #tpu.memory_space<vmem>>, vector<1x128xf32>
    %31 = vector.broadcast %30 : vector<1x128xf32> to vector<8x128xf32>
    %32 = arith.addf %29, %31 : vector<8x128xf32>
    %cst_19 = arith.constant 0.000000e+00 : f32
    %33 = vector.broadcast %cst_19 : f32 to vector<8x128xf32>
    %34 = arith.maximumf %32, %33 : vector<8x128xf32>
    %35 = arith.truncf %34 : vector<8x128xf32> to vector<8x128xbf16>
    %c0_20 = arith.constant 0 : index
    %c0_21 = arith.constant 0 : index
    %36 = vector.load %arg5[%c0_20, %c0_21] : memref<128x128xbf16, #tpu.memory_space<vmem>>, vector<128x128xbf16>
    %cst_22 = arith.constant dense<0.000000e+00> : vector<8x128xf32>
    %37 = tpu.matmul %35, %36, %cst_22 {dimension_numbers = #tpu.dot_dimension_numbers<[1], [0], [0], [1], [0, 0, 1, 1], [], []>} : vector<8x128xbf16>, vector<128x128xbf16>, vector<8x128xf32> -> vector<8x128xf32>
    %c4 = arith.constant 4 : index
    %c0_23 = arith.constant 0 : index
    %38 = vector.load %arg7[%c4, %c0_23] : memref<6x128xf32, #tpu.memory_space<vmem>>, vector<1x128xf32>
    %39 = vector.broadcast %38 : vector<1x128xf32> to vector<8x128xf32>
    %40 = arith.addf %37, %39 : vector<8x128xf32>
    %cst_24 = arith.constant 0.000000e+00 : f32
    %41 = vector.broadcast %cst_24 : f32 to vector<8x128xf32>
    %42 = arith.maximumf %40, %41 : vector<8x128xf32>
    %43 = arith.truncf %42 : vector<8x128xf32> to vector<8x128xbf16>
    %c0_25 = arith.constant 0 : index
    %c0_26 = arith.constant 0 : index
    %44 = vector.load %arg6[%c0_25, %c0_26] : memref<128x128xbf16, #tpu.memory_space<vmem>>, vector<128x128xbf16>
    %cst_27 = arith.constant dense<0.000000e+00> : vector<8x128xf32>
    %45 = tpu.matmul %43, %44, %cst_27 {dimension_numbers = #tpu.dot_dimension_numbers<[1], [0], [0], [1], [0, 0, 1, 1], [], []>} : vector<8x128xbf16>, vector<128x128xbf16>, vector<8x128xf32> -> vector<8x128xf32>
    %c5 = arith.constant 5 : index
    %c0_28 = arith.constant 0 : index
    %46 = vector.load %arg7[%c5, %c0_28] : memref<6x128xf32, #tpu.memory_space<vmem>>, vector<1x128xf32>
    %47 = vector.broadcast %46 : vector<1x128xf32> to vector<8x128xf32>
    %48 = arith.addf %45, %47 : vector<8x128xf32>
    %49 = math.tanh %48 : vector<8x128xf32>
    %c0_29 = arith.constant 0 : index
    %c0_30 = arith.constant 0 : index
    %50 = vector.load %arg8[%c0_29, %c0_30] : memref<8x128xf32, #tpu.memory_space<vmem>>, vector<8x128xf32>
    tpu.vector_store %arg8[%c0_29, %c0_30], %49 {strides = array<i32>} : memref<8x128xf32, #tpu.memory_space<vmem>>, vector<8x128xf32>,
    return
  }
}

</mosaic_0001>

<bundles_post_ra>
// kernel: tpu_custom_call.1
= control target key start
LH: loop header
LB: loop body
LE: loop exit
PB: predicated region body
PF: predicated region fallthrough
CT: control target
= control target key end

     0   :  { %13 = vsyncpa [#allocation3], 0  ;;  %s1220_s0 = inlined_call_operand.hbm [shape: f32[8,32], index: 0, kind: input, shape index: {}]   ;;  %s1221_s1 = inlined_call_operand.hbm [shape: bf16[32,256], index: 1, kind: input, shape index: {}]   ;;  %s1222_s2 = inlined_call_operand.hbm [shape: bf16[128,128], index: 2, kind: input, shape index: {}]   ;;  %s1223_s3 = inlined_call_operand.hbm [shape: bf16[128,128], index: 3, kind: input, shape index: {}]   ;;  %s1224_s4 = inlined_call_operand.hbm [shape: bf16[128,128], index: 4, kind: input, shape index: {}]   ;;  %s1225_s5 = inlined_call_operand.hbm [shape: bf16[128,128], index: 5, kind: input, shape index: {}]   ;;  %s1226_s6 = inlined_call_operand.hbm [shape: bf16[128,128], index: 6, kind: input, shape index: {}]   ;;  %s1227_s7 = inlined_call_operand.hbm [shape: f32[6,128], index: 7, kind: input, shape index: {}]   ;;  %s1228_s8 = inlined_call_operand.hbm [shape: f32[8,128], index: 8, kind: output, shape index: {}]  }
   0x1   :  { %14 = vsyncpa [#allocation6], 0 }
   0x2   :  { %15 = vsyncpa [#allocation9], 0 }
   0x3   :  { %16 = vsyncpa [#allocation12], 0 }
   0x4   :  { %17 = vsyncpa [#allocation15], 0  ;;  %s34_s29 = sshll.u32 %s1221_s1, 4  ;;  %s35_s29 = int_to_ptr.hbm [resolvable:$true] %s34_s29 }
   0x5   :  { %18 = vsyncpa [#allocation4], 0  ;;  %s1114_s30 = smov [#allocation5]   ;;  %s1115_s10 = smov 128  }
   0x6   :  { %s36_s9 = sshll.u32 %s1114_s30, 4  ;;  %s1116_s11 = smov 8   ;;  %s37_s9 = int_to_ptr.vmem [resolvable:$true] %s36_s9 }
   0x7   :  { %42 = dma.hbm_to_vmem [thread:$0]  %s35_s29, 512, %s37_s9, [#allocation6], %s1115_s10, %s1115_s10, %s1116_s11  }
   0x8   :  { %s60_s14 = sshll.u32 %s1223_s3, 4  ;;  %s1117_s15 = smov [#allocation8]   ;;  %s61_s14 = int_to_ptr.hbm [resolvable:$true] %s60_s14 }
   0x9   :  { %s62_s16 = sshll.u32 %s1117_s15, 4  ;;  %s86_s19 = sshll.u32 %s1225_s5, 4  ;;  %s63_s16 = int_to_ptr.vmem [resolvable:$true] %s62_s16  ;;  %s87_s19 = int_to_ptr.hbm [resolvable:$true] %s86_s19 }
   0xa   :  { %s1118_s1 = smov 64   ;;  %s1119_s20 = smov 4  }
   0xb   :  { %68 = dma.hbm_to_vmem [thread:$0]  %s61_s14, 1024, %s63_s16, [#allocation9], %s1118_s1, %s1118_s1, %s1119_s20  }
   0xc   :  { %s24_s23 = sshll.u32 %s1220_s0, 4  ;;  %s1120_s3 = smov [#allocation11]   ;;  %s25_s23 = int_to_ptr.hbm [resolvable:$true] %s24_s23 }
   0xd   :  { %s88_s24 = sshll.u32 %s1120_s3, 4  ;;  %s1121_s5 = smov [#allocation2]   ;;  %s89_s24 = int_to_ptr.vmem [resolvable:$true] %s88_s24 }
   0xe   :  { %94 = dma.hbm_to_vmem [thread:$0]  %s87_s19, 1024, %s89_s24, [#allocation12], %s1118_s1, %s1118_s1, %s1119_s20  }
   0xf   :  { %s26_s25 = sshll.u32 %s1121_s5, 4  ;;  %s47_s28 = sshll.u32 %s1222_s2, 4  ;;  %s27_s25 = int_to_ptr.vmem [resolvable:$true] %s26_s25  ;;  %s48_s28 = int_to_ptr.hbm [resolvable:$true] %s47_s28 }
  0x10   :  { %29 = dma.hbm_to_vmem [thread:$0]  %s25_s23, 128, %s27_s25, [#allocation3]  }
  0x11   :  { %s73_s0 = sshll.u32 %s1224_s4, 4  ;;  %s1122_s9 = smov [#allocation7]   ;;  %s74_s0 = int_to_ptr.hbm [resolvable:$true] %s73_s0 }
  0x12   :  { %s49_s10 = sshll.u32 %s1122_s9, 4  ;;  %s1123_s11 = smov [#allocation10]   ;;  %s50_s10 = int_to_ptr.vmem [resolvable:$true] %s49_s10 }
  0x13   :  { %55 = dma.hbm_to_vmem [thread:$0]  %s48_s28, 1024, %s50_s10, [#allocation6], %s1118_s1, %s1118_s1, %s1119_s20  }
  0x14   :  { %s75_s12 = sshll.u32 %s1123_s11, 4  ;;  %s99_s2 = sshll.u32 %s1226_s6, 4  ;;  %s76_s12 = int_to_ptr.vmem [resolvable:$true] %s75_s12  ;;  %s100_s2 = int_to_ptr.hbm [resolvable:$true] %s99_s2 }
  0x15   :  { %81 = dma.hbm_to_vmem [thread:$0]  %s74_s0, 1024, %s76_s12, [#allocation9], %s1118_s1, %s1118_s1, %s1119_s20  }
  0x16   :  { %s113_s16 = sshll.u32 %s1227_s7, 4  ;;  %s1124_s17 = smov [#allocation13]   ;;  %s114_s16 = int_to_ptr.hbm [resolvable:$true] %s113_s16 }
  0x17   :  { %s101_s18 = sshll.u32 %s1124_s17, 4  ;;  %s1125_s19 = smov [#allocation14]   ;;  %s102_s18 = int_to_ptr.vmem [resolvable:$true] %s101_s18 }
  0x18   :  { %107 = dma.hbm_to_vmem [thread:$0]  %s100_s2, 1024, %s102_s18, [#allocation12], %s1118_s1, %s1118_s1, %s1119_s20  }
  0x19   :  { %s115_s6 = sshll.u32 %s1125_s19, 4  ;;  %s116_s6 = int_to_ptr.vmem [resolvable:$true] %s115_s6 }
  0x1a   :  { %118 = dma.hbm_to_vmem [thread:$0]  %s114_s16, 128, %s116_s6, [#allocation15]  }
  0x1b   :  { %1102 = dma.done.wait [#allocation3], 128  }
  0x1c   :  { %1103 = vsyncadd [#allocation3], 4294967168 }
  0x1d   :  { %1104 = dma.done.wait [#allocation6], 1536  }
  0x1e   :  { %1105 = vsyncadd [#allocation6], 4294965760 }
  0x1f   :  { %1106 = dma.done.wait [#allocation9], 2048  }
  0x20   :  { %1107 = vsyncadd [#allocation9], 4294965248 }
  0x21   :  { %1108 = dma.done.wait [#allocation12], 2048  }
  0x22   :  { %1109 = vsyncadd [#allocation12], 4294965248 }
  0x23   :  { %1110 = dma.done.wait [#allocation15], 128  }
  0x24   :  { %1111 = vsyncadd [#allocation15], 4294967168  ;;  %v651_v0 = vld [vmem:[#allocation5 + $0x10] sm:$0xf]  ;;  %v822_v1 = vld [vmem:[#allocation5 + $0x14] sm:$0xf0] }
  0x25   :  { %v643_v2 = vld [vmem:[#allocation5] sm:$0xf]  ;;  %v652_v3 = vor.u32 %v822_v1, %v651_v0  ;;  %v820_v4 = vld [vmem:[#allocation5 + $0x4] sm:$0xf0]  ;;  %v830_v5 = vld [vmem:[#allocation7 + $0x38] sm:$0xff]  ;;  %vm178_vm0 = vcmask 261120  }
  0x26   :  { %v644_v6 = vor.u32 %v820_v4, %v643_v2  ;;  %v152_v7 = vld [vmem:[#allocation2] sm:$0xff]  ;;  %279 = vmatpush.bf16.msra.mxu2 %v830_v5  ;;  %v829_v8 = vld [vmem:[#allocation7 + $0x30] sm:$0xff]  ;;  %v828_v10 = vld [vmem:[#allocation7 + $0x28] sm:$0xff]  ;;  %s1126_s7 = smov [#allocation16]   ;;  %s627_s22 = sshll.u32 %s1228_s8, 4  ;;  %s628_s22 = int_to_ptr.hbm [resolvable:$true] %s627_s22 }
  0x27   :  { %188 = vmatpush.bf16.msra.mxu0 %v652_v3  ;;  %v1211_v9 = vpack.c.bf16 %v152_v7, %v152_v7  ;;  %v827_v11 = vld [vmem:[#allocation7 + $0x20] sm:$0xff]  ;;  %v826_v12 = vld [vmem:[#allocation7 + $0x18] sm:$0xff]  ;;  %v825_v13 = vld [vmem:[#allocation7 + $0x10] sm:$0xff]  ;;  %s625_s1 = sshll.u32 %s1126_s7, 4  ;;  %s626_s1 = int_to_ptr.vmem [resolvable:$true] %s625_s1 }
  0x28   :  { %v824_v14 = vld [vmem:[#allocation7 + $0x8] sm:$0xff]  ;;  %v823_v15 = vld [vmem:[#allocation7] sm:$0xff]  ;;  %v838_v16 = vld [vmem:[#allocation8 + $0x38] sm:$0xff] }
  0x29   :  { %360 = vmatpush.bf16.msra.mxu3 %v838_v16  ;;  %v837_v17 = vld [vmem:[#allocation8 + $0x30] sm:$0xff]  ;;  %v836_v18 = vld [vmem:[#allocation8 + $0x28] sm:$0xff]  ;;  %v835_v19 = vld [vmem:[#allocation8 + $0x20] sm:$0xff] }
  0x2a   :  { %280 = vmatpush.bf16.msra.mxu2 %v829_v8  ;;  %v834_v20 = vld [vmem:[#allocation8 + $0x18] sm:$0xff]  ;;  %v833_v21 = vld [vmem:[#allocation8 + $0x10] sm:$0xff]  ;;  %v876_v22 = vld [vmem:[#allocation14] ss:$0 sm:$0xff] }
  0x2b   :  { %189 = vmatpush.bf16.msra.mxu0 %v644_v6  ;;  %v832_v28 = vld [vmem:[#allocation8 + $0x8] sm:$0xff]  ;;  %v831_v29 = vld [vmem:[#allocation8] sm:$0xff]  ;;  %v846_v30 = vld [vmem:[#allocation10 + $0x38] sm:$0xff] }
  0x2c   :  { %v821_v31 = vld [vmem:[#allocation5 + $0x14] sm:$0xf]  ;;  %v653_v32 = vld [vmem:[#allocation5 + $0x18] sm:$0xf0]  ;;  %v844_v35 = vld [vmem:[#allocation10 + $0x28] sm:$0xff] }
  0x2d   :  { %361 = vmatpush.bf16.msra.mxu3 %v837_v17  ;;  %v845_v33 = vld [vmem:[#allocation10 + $0x30] sm:$0xff]  ;;  %v656_v34 = vor.u32 %v821_v31, %v653_v32  ;;  %v843_v36 = vld [vmem:[#allocation10 + $0x20] sm:$0xff]  ;;  %v842_v37 = vld [vmem:[#allocation10 + $0x18] sm:$0xff] }
  0x2e   :  { %657 = vmatmul.msk.bf16.vlgmr.msra.gmra.mxu0 %vm178_vm0, %v1211_v9  ;;  %281 = vmatpush.bf16.msra.mxu2 %v828_v10  ;;  %v877_v38 = vld [vmem:[#allocation14 + $0x1] ss:$0 sm:$0xff]  ;;  %v819_v44 = vld [vmem:[#allocation5 + $0x4] sm:$0xf]  ;;  %v645_v45 = vld [vmem:[#allocation5 + $0x8] sm:$0xf0] }
  0x2f   :  { %439 = vmatpush.bf16.msrb.mxu0 %v846_v30  ;;  %201 = vmatpush.bf16.msra.mxu1 %v656_v34  ;;  %v648_v46 = vor.u32 %v819_v44, %v645_v45  ;;  %v841_v47 = vld [vmem:[#allocation10 + $0x10] sm:$0xff]  ;;  %v840_v48 = vld [vmem:[#allocation10 + $0x8] sm:$0xff]  ;;  %v839_v49 = vld [vmem:[#allocation10] sm:$0xff] }
  0x30   :  { %v854_v50 = vld [vmem:[#allocation11 + $0x38] sm:$0xff]  ;;  %v853_v51 = vld [vmem:[#allocation11 + $0x30] sm:$0xff]  ;;  %v852_v52 = vld [vmem:[#allocation11 + $0x28] sm:$0xff] }
  0x31   :  { %362 = vmatpush.bf16.msra.mxu3 %v836_v18  ;;  %v851_v53 = vld [vmem:[#allocation11 + $0x20] sm:$0xff]  ;;  %v850_v60 = vld [vmem:[#allocation11 + $0x18] sm:$0xff]  ;;  %v849_v61 = vld [vmem:[#allocation11 + $0x10] sm:$0xff] }
  0x32   :  { %282 = vmatpush.bf16.msra.mxu2 %v827_v11  ;;  %v878_v54 = vld [vmem:[#allocation14 + $0x2] ss:$0 sm:$0xff]  ;;  %v848_v0 = vld [vmem:[#allocation11 + $0x8] sm:$0xff]  ;;  %v862_v2 = vld [vmem:[#allocation13 + $0x38] sm:$0xff] }
  0x33   :  { %440 = vmatpush.bf16.msrb.mxu0 %v845_v33  ;;  %202 = vmatpush.bf16.msra.mxu1 %v648_v46  ;;  %v847_v1 = vld [vmem:[#allocation11] sm:$0xff]  ;;  %v861_v3 = vld [vmem:[#allocation13 + $0x30] sm:$0xff]  ;;  %v860_v4 = vld [vmem:[#allocation13 + $0x28] sm:$0xff] }
  0x34   :  { %v859_v5 = vld [vmem:[#allocation13 + $0x20] sm:$0xff]  ;;  %v858_v6 = vld [vmem:[#allocation13 + $0x18] sm:$0xff]  ;;  %v857_v7 = vld [vmem:[#allocation13 + $0x10] sm:$0xff] }
  0x35   :  { %363 = vmatpush.bf16.msra.mxu3 %v835_v19  ;;  %v879_v8 = vld [vmem:[#allocation14 + $0x3] ss:$0 sm:$0xff]  ;;  %v880_v17 = vld [vmem:[#allocation14 + $0x4] ss:$0 sm:$0xff] }
  0x36   :  { %283 = vmatpush.bf16.msra.mxu2 %v826_v12  ;;  %658 = vmatmul.msk.bf16.vlgmr.msra.gmra.mxu1 %vm178_vm0, %v1211_v9  ;;  %v855_v16 = vld [vmem:[#allocation13] sm:$0xff] }
  0x37   :  { %441 = vmatpush.bf16.msrb.mxu0 %v844_v35  ;;  %524 = vmatpush.bf16.msrb.mxu1 %v854_v50 }
  0x39   :  { %364 = vmatpush.bf16.msra.mxu3 %v834_v20 }
  0x3a   :  { %284 = vmatpush.bf16.msra.mxu2 %v825_v13 }
  0x3b   :  { %442 = vmatpush.bf16.msrb.mxu0 %v843_v36  ;;  %525 = vmatpush.bf16.msrb.mxu1 %v853_v51 }
  0x3d   :  { %365 = vmatpush.bf16.msra.mxu3 %v833_v21 }
  0x3e   :  { %285 = vmatpush.bf16.msra.mxu2 %v824_v14 }
  0x3f   :  { %443 = vmatpush.bf16.msrb.mxu0 %v842_v37  ;;  %526 = vmatpush.bf16.msrb.mxu1 %v852_v52 }
  0x41   :  { %366 = vmatpush.bf16.msra.mxu3 %v832_v28 }
  0x42   :  { %286 = vmatpush.bf16.msra.mxu2 %v823_v15  ;;  %v856_v15 = vld [vmem:[#allocation13 + $0x8] sm:$0xff] }
  0x43   :  { %444 = vmatpush.bf16.msrb.mxu0 %v841_v47  ;;  %527 = vmatpush.bf16.msrb.mxu1 %v851_v53 }
  0x45   :  { %367 = vmatpush.bf16.msra.mxu3 %v831_v29 }
  0x46   :  { %605 = vmatpush.bf16.msrb.mxu2 %v862_v2 }
  0x47   :  { %445 = vmatpush.bf16.msrb.mxu0 %v840_v48  ;;  %528 = vmatpush.bf16.msrb.mxu1 %v850_v60 }
  0x4a   :  { %606 = vmatpush.bf16.msrb.mxu2 %v861_v3 }
  0x4b   :  { %446 = vmatpush.bf16.msrb.mxu0 %v839_v49  ;;  %529 = vmatpush.bf16.msrb.mxu1 %v849_v61 }
  0x4e   :  { %607 = vmatpush.bf16.msrb.mxu2 %v860_v4 }
  0x4f   :  { %530 = vmatpush.bf16.msrb.mxu1 %v848_v0 }
  0x52   :  { %608 = vmatpush.bf16.msrb.mxu2 %v859_v5 }
  0x53   :  { %531 = vmatpush.bf16.msrb.mxu1 %v847_v1 }
  0x56   :  { %609 = vmatpush.bf16.msrb.mxu2 %v858_v6 }
  0x5a   :  { %610 = vmatpush.bf16.msrb.mxu2 %v857_v7 }
  0x5e   :  { %611 = vmatpush.bf16.msrb.mxu2 %v856_v15 }
  0x62   :  { %612 = vmatpush.bf16.msrb.mxu2 %v855_v16 }
  0xab   :  { %v191_v23 = vpop.f32.mrf.mxu0 }
  0xac   :  { %v210_v24 = vadd.f32 %v876_v22, %v191_v23  ;;  %v881_v23 = vld [vmem:[#allocation14 + $0x5] ss:$0 sm:$0xff] }
  0xae   :  { %v211_v25 = vmax.f32 %v210_v24, 0.0 }
  0xb0   :  { %v212_v26 = vpack.c.bf16 %v211_v25, %v211_v25 }
  0xb2   :  { %287 = vmatmul.bf16.vlgmr.msra.gmra.mxu2 %v212_v26 }
  0xb3   :  { %v193_v27 = vpop.f32.mrf.mxu0  ;;  %v204_v62 = vpop.f32.mrf.mxu1 }
  0xbb   :  { %v206_v63 = vpop.f32.mrf.mxu1 }
 0x135   :  { %v288_v39 = vpop.f32.mrf.mxu2 }
 0x136   :  { %v289_v40 = vadd.f32 %v877_v38, %v288_v39 }
 0x138   :  { %v292_v41 = vmax.f32 %v289_v40, 0.0 }
 0x13a   :  { %v293_v42 = vpack.c.bf16 %v292_v41, %v292_v41 }
 0x13c   :  { %368 = vmatmul.bf16.vlgmr.msra.gmra.mxu3 %v293_v42 }
 0x13d   :  { %v290_v43 = vpop.f32.mrf.mxu2 }
 0x1bf   :  { %v369_v55 = vpop.f32.mrf.mxu3 }
 0x1c0   :  { %v370_v56 = vadd.f32 %v878_v54, %v369_v55 }
 0x1c2   :  { %882 = vtanh.f32 %v370_v56 }
 0x1c7   :  { %v371_v57 = vpop.f32.mrf.mxu3 }
 0x1c8   :  { %v883_v58 = vpop.eup %882 }
 0x1c9   :  { %v374_v59 = vpack.c.bf16 %v883_v58, %v883_v58 }
 0x1cb   :  { %447 = vmatmul.bf16.vlgmr.msrb.gmra.mxu0 %v374_v59 }
 0x248   :  { %v448_v9 = vpop.f32.mrf.mxu0 }
 0x249   :  { %v452_v10 = vadd.f32 %v448_v9, %v204_v62 }
 0x24b   :  { %v455_v11 = vadd.f32 %v879_v8, %v452_v10 }
 0x24d   :  { %v456_v12 = vmax.f32 %v455_v11, 0.0 }
 0x24f   :  { %v457_v13 = vpack.c.bf16 %v456_v12, %v456_v12 }
 0x250   :  { %v450_v14 = vpop.f32.mrf.mxu0 }
 0x251   :  { %532 = vmatmul.bf16.vlgmr.msrb.gmra.mxu1 %v457_v13 }
 0x2ce   :  { %v533_v18 = vpop.f32.mrf.mxu1 }
 0x2cf   :  { %v534_v19 = vadd.f32 %v880_v17, %v533_v18 }
 0x2d1   :  { %v537_v20 = vmax.f32 %v534_v19, 0.0 }
 0x2d3   :  { %v538_v21 = vpack.c.bf16 %v537_v20, %v537_v20 }
 0x2d5   :  { %613 = vmatmul.bf16.vlgmr.msrb.gmra.mxu2 %v538_v21 }
 0x2d6   :  { %v535_v22 = vpop.f32.mrf.mxu1 }
 0x358   :  { %v614_v24 = vpop.f32.mrf.mxu2 }
 0x359   :  { %v615_v25 = vadd.f32 %v881_v23, %v614_v24 }
 0x35b   :  { %884 = vtanh.f32 %v615_v25 }
 0x360   :  { %v616_v26 = vpop.f32.mrf.mxu2 }
 0x361   :  { %v885_v27 = vpop.eup %884 }
 0x362   :  { %619 = vst [vmem:[#allocation16] sm:$0xff] %v885_v27 }
 0x363   :  { %630 = dma.vmem_to_hbm [thread:$0]  %s626_s1, 128, %s628_s22, [#allocation4]  }
 0x364   :  { %1112 = dma.done.wait [#allocation4], 128  }
 0x365   :  { %1113 = vsyncadd [#allocation4], 4294967168 }
 0x366   :  { %635 = vsyncpa [#allocation3], 1 }
 0x367   :  { %636 = vsyncpa [#allocation6], 1 }
 0x368   :  { %637 = vsyncpa [#allocation9], 1 }
 0x369   :  { %638 = vsyncpa [#allocation12], 1 }
 0x36a   :  { %639 = vsyncpa [#allocation15], 1 }
 0x36b   :  { %640 = vsyncpa [#allocation4], 1 }

</bundles_post_ra>
